<compile_context>
chip_gen: v5e
topology: v5e:2x2
jax: 0.10.0
libtpu: 0.0.40
codegen_flags: <defaults>
</compile_context>

<pallas_src>
import jax
import jax.numpy as jnp
from jax import lax
from jax.experimental import pallas as pl
from jax.experimental.pallas import tpu as pltpu


def _round_up(x, m):
    return ((x + m - 1) // m) * m


def _sublane_multiple(dtype):
    itemsize = jnp.dtype(dtype).itemsize
    if itemsize >= 4:
        return 8
    if itemsize == 2:
        return 16
    return 32


def _vmem_capacity_bytes():
    # v5e/v6e: 128 MiB per TensorCore, v7x: 64 MiB. Fall back conservatively
    # (v7x figure) if the query is unavailable.
    try:
        return int(pltpu.get_tpu_info().vmem_capacity_bytes)
    except Exception:
        return 64 * 1024 * 1024


def _make_gram_kernel(tk, rem):
    """Build the kernel. `rem` = number of valid lanes in the final k tile."""

    def kernel(f_ref, o_ref, acc_ref):
        # f_ref:   (c_pad, tk)     feature tile (one batch element, one hw chunk)
        # o_ref:   (c_pad, c_pad)  Gram output for this batch element (f32)
        # acc_ref: (c_pad, c_pad)  f32 accumulator, resident across the hw axis
        k = pl.program_id(1)
        num_k = pl.num_programs(1)

        @pl.when(k == 0)
        def _init():
            acc_ref[...] = jnp.zeros_like(acc_ref)

        def _accumulate(f):
            # Contract the lane (hw) axis of both operands: f @ f.T without an
            # explicit transpose/relayout of the (c_pad, tk) tile.  This is the
            # same MXU-native "transposed RHS" contraction used for Q.K^T.
            acc_ref[...] += lax.dot_general(
                f, f,
                dimension_numbers=(((1,), (1,)), ((), ())),
                preferred_element_type=jnp.float32,
            )

        if rem == tk:
            # hw divides evenly into tk-sized tiles: no masking needed.
            _accumulate(f_ref[...])
        else:
            # Ragged final tile: out-of-bounds lanes of a Pallas block are not
            # guaranteed to be zero, so zero them explicitly on the last step
            # only; the common path stays mask-free.
            @pl.when(k < num_k - 1)
            def _full():
                _accumulate(f_ref[...])

            @pl.when(k == num_k - 1)
            def _ragged():
                f = f_ref[...]
                lane = lax.broadcasted_iota(jnp.int32, f.shape, 1)
                _accumulate(jnp.where(lane < rem, f, jnp.zeros_like(f)))

        @pl.when(k == num_k - 1)
        def _store():
            o_ref[...] = acc_ref[...].astype(o_ref.dtype)

    return kernel


def gram_matrix(x, *, compute_dtype=jnp.bfloat16, max_tile_k=8192,
                input_buffer_budget_bytes=None):
    """x: (b, c, h, w) float array -> (b, 1, c, c) Gram matrices (float32).

    compute_dtype: dtype streamed through the kernel.  bfloat16 (default)
    halves the HBM read traffic of this memory-bound kernel while the MXU
    still accumulates in f32; pass None to stream x.dtype unchanged.
    max_tile_k: testing override for the reduction tile; leave at the default
    in production (a TK floor of ~2048 lanes is applied when hw allows).
    """
    b, c, h, w = x.shape
    hw = h * w

    compute_dtype = jnp.dtype(x.dtype if compute_dtype is None else compute_dtype)
    c_itemsize = compute_dtype.itemsize
    out_dtype = jnp.float32
    out_itemsize = jnp.dtype(out_dtype).itemsize

    # Dtype-aware sublane rounding for the channel (second-to-last) dim.
    c_pad = _round_up(c, _sublane_multiple(compute_dtype))

    # ---- VMEM-budgeted reduction tile (derived jointly with the limit) -----
    vmem_cap = _vmem_capacity_bytes()
    limit_cap = min(48 * 1024 * 1024, vmem_cap // 2)   # <=32 MiB on v7x, 48 MiB on v5e/v6e
    if input_buffer_budget_bytes is None:
        input_buffer_budget_bytes = (8 * 1024 * 1024 if vmem_cap > 96 * 1024 * 1024
                                     else 4 * 1024 * 1024)

    fixed_bytes = 2 * c_pad * c_pad * out_itemsize + c_pad * c_pad * 4  # out blocks + f32 acc
    hw128 = _round_up(hw, 128)

    buf_budget = min(input_buffer_budget_bytes,
                     max(limit_cap - fixed_bytes, 2 * 128 * c_pad * c_itemsize) // 2)
    tk_vmem = max(128, (buf_budget // (c_pad * c_itemsize)) // 128 * 128)
    tk_floor = min(2048, hw128)   # amortize per-step overhead / acc writeback
    tk = min(hw128, max_tile_k, max(tk_vmem, tk_floor))
    if 2 * c_pad * tk * c_itemsize + fixed_bytes > limit_cap:
        tk = min(hw128, max_tile_k, tk_vmem)   # drop the floor if it overshoots
    num_k = pl.cdiv(hw, tk)
    rem = hw - (num_k - 1) * tk   # valid lanes in the final (possibly ragged) tile

    # ---- features: reshape is metadata-only; channel pad only if unaligned --
    feat = x.reshape(b, c, hw)
    if compute_dtype != jnp.dtype(x.dtype):
        feat = feat.astype(compute_dtype)
    if c_pad != c:
        # Zero channel rows are exact for a Gram accumulation (sliced off below).
        # The hw axis is never padded; its ragged tail is masked in-kernel.
        feat = jnp.pad(feat, ((0, 0), (0, c_pad - c), (0, 0)))

    vmem_bytes = 2 * c_pad * tk * c_itemsize + fixed_bytes
    vmem_limit = int(min(limit_cap, max(2 * vmem_bytes, 4 * 1024 * 1024)))

    cost = pl.CostEstimate(
        flops=2 * b * c_pad * c_pad * num_k * tk,
        transcendentals=0,
        bytes_accessed=b * c_pad * hw * c_itemsize + b * c_pad * c_pad * out_itemsize,
    )

    gram_padded = pl.pallas_call(
        _make_gram_kernel(tk, rem),
        out_shape=jax.ShapeDtypeStruct((b, c_pad, c_pad), out_dtype),
        grid_spec=pltpu.PrefetchScalarGridSpec(
            num_scalar_prefetch=0,
            grid=(b, num_k),
            in_specs=[
                pl.BlockSpec((pl.Squeezed(), c_pad, tk), lambda i, k: (i, 0, k)),
            ],
            out_specs=pl.BlockSpec((pl.Squeezed(), c_pad, c_pad),
                                   lambda i, k: (i, 0, 0)),
            scratch_shapes=[pltpu.VMEM((c_pad, c_pad), jnp.float32)],
        ),
        compiler_params=pltpu.CompilerParams(
            dimension_semantics=("parallel", "arbitrary"),
            vmem_limit_bytes=vmem_limit,
        ),
        cost_estimate=cost,
    )(feat)

    gram = gram_padded[:, :c, :c]
    # Match PyTorch's gram.view(b, 1, c, c)
    return gram.reshape(b, 1, c, c)


def gram_matrix_reference(x, compute_dtype=None):
    b, c, h, w = x.shape
    feat = x.reshape(b, c, h * w)
    if compute_dtype is not None:
        feat = feat.astype(compute_dtype)
    gram = jnp.einsum("bcn,bdn->bcd", feat, feat,
                      precision="highest", preferred_element_type=jnp.float32)
    return gram.reshape(b, 1, c, c)


if __name__ == "__main__":
    key = jax.random.PRNGKey(0)

    # Test 1: small module-consistent shape, f32 streaming path, single k-step.
    b, c, h, w = 2, 4, 16, 16
    x = jax.random.normal(key, (b, c, h, w), dtype=jnp.float32)
    out = jax.block_until_ready(gram_matrix(x, compute_dtype=jnp.float32))
    ref = gram_matrix_reference(x)
    assert out.shape == (b, 1, c, c), out.shape
    assert jnp.allclose(out, ref, rtol=5e-3, atol=0.5), "mismatch (f32, single step)"

    # Test 2: default bf16 streaming, multiple k-steps + ragged final tile mask
    # (hw = 2304, tk forced to 2048 -> 2 steps, rem = 256) + channel pad 8->16.
    b2, c2, h2, w2 = 2, 8, 48, 48
    x2 = jax.random.normal(jax.random.PRNGKey(1), (b2, c2, h2, w2), dtype=jnp.float32)
    out2 = jax.block_until_ready(gram_matrix(x2, max_tile_k=2048))
    ref2_bf16 = gram_matrix_reference(x2, compute_dtype=jnp.bfloat16)
    ref2_f32 = gram_matrix_reference(x2)
    assert out2.shape == (b2, 1, c2, c2), out2.shape
    assert jnp.allclose(out2, ref2_bf16, rtol=2e-3, atol=0.25), "mismatch (bf16, tiled)"
    assert jnp.allclose(out2, ref2_f32, rtol=5e-2, atol=2.0), "bf16 path drifted from f32 ref"

    # Test 3: hw (324) smaller than the 128-aligned block (384) -> single ragged
    # block exercising the in-kernel mask without any wrapper padding of hw.
    b3, c3, h3, w3 = 2, 4, 18, 18
    x3 = jax.random.normal(jax.random.PRNGKey(2), (b3, c3, h3, w3), dtype=jnp.float32)
    out3 = jax.block_until_ready(gram_matrix(x3, compute_dtype=jnp.float32))
    ref3 = gram_matrix_reference(x3)
    assert out3.shape == (b3, 1, c3, c3), out3.shape
    assert jnp.allclose(out3, ref3, rtol=5e-3, atol=0.5), "mismatch (ragged single block)"

    print("KERNEL_OK")
</pallas_src>

<mosaic_0001>
module attributes {stable_mosaic.version = 11 : i64} {
  func.func @kernel(%arg0: i32, %arg1: i32, %arg2: memref<1x8x256xf32, #tpu.memory_space<vmem>>, %arg3: memref<1x8x8xf32, #tpu.memory_space<vmem>>, %arg4: memref<8x8xf32, #tpu.memory_space<vmem>>) attributes {dimension_semantics = [#tpu.dimension_semantics<parallel>, #tpu.dimension_semantics<arbitrary>], iteration_bounds = array<i64: 2, 1>, scalar_prefetch = 0 : i64, scratch_operands = 1 : i64, tpu.core_type = #tpu.core_type<tc>, window_params = [{transform_indices = @transform_0, window_bounds = array<i64: 1, 8, 256>}, {transform_indices = @transform_1, window_bounds = array<i64: 1, 8, 8>}]} {
    %c0_i32 = arith.constant 0 : i32
    %0 = arith.cmpi eq, %arg1, %c0_i32 : i32
    %1 = arith.extui %0 : i1 to i32
    %c0_i32_0 = arith.constant 0 : i32
    %2 = arith.cmpi ne, %1, %c0_i32_0 : i32
    scf.if %2 {
      %cst_9 = arith.constant 0.000000e+00 : f32
      %12 = vector.broadcast %cst_9 : f32 to vector<8x8xf32>
      %c0_10 = arith.constant 0 : index
      %c0_11 = arith.constant 0 : index
      %13 = vector.load %arg4[%c0_10, %c0_11] : memref<8x8xf32, #tpu.memory_space<vmem>>, vector<8x8xf32>
      tpu.vector_store %arg4[%c0_10, %c0_11], %12 {strides = array<i32>} : memref<8x8xf32, #tpu.memory_space<vmem>>, vector<8x8xf32>,
    } else {
    }
    %c0 = arith.constant 0 : index
    %c0_1 = arith.constant 0 : index
    %c0_2 = arith.constant 0 : index
    %3 = vector.load %arg2[%c0, %c0_1, %c0_2] : memref<1x8x256xf32, #tpu.memory_space<vmem>>, vector<1x8x256xf32>
    %4 = vector.shape_cast %3 : vector<1x8x256xf32> to vector<8x256xf32>
    %c0_3 = arith.constant 0 : index
    %c0_4 = arith.constant 0 : index
    %5 = vector.load %arg4[%c0_3, %c0_4] : memref<8x8xf32, #tpu.memory_space<vmem>>, vector<8x8xf32>
    %cst = arith.constant dense<0.000000e+00> : vector<8x8xf32>
    %6 = tpu.matmul %4, %4, %cst {dimension_numbers = #tpu.dot_dimension_numbers<[1], [1], [0], [0], [0, 0, 1, 0], [], []>} : vector<8x256xf32>, vector<8x256xf32>, vector<8x8xf32> -> vector<8x8xf32>
    %7 = arith.addf %5, %6 : vector<8x8xf32>
    %c0_5 = arith.constant 0 : index
    %c0_6 = arith.constant 0 : index
    %8 = vector.load %arg4[%c0_5, %c0_6] : memref<8x8xf32, #tpu.memory_space<vmem>>, vector<8x8xf32>
    tpu.vector_store %arg4[%c0_5, %c0_6], %7 {strides = array<i32>} : memref<8x8xf32, #tpu.memory_space<vmem>>, vector<8x8xf32>,
    %c0_i32_7 = arith.constant 0 : i32
    %9 = arith.cmpi eq, %arg1, %c0_i32_7 : i32
    %10 = arith.extui %9 : i1 to i32
    %c0_i32_8 = arith.constant 0 : i32
    %11 = arith.cmpi ne, %10, %c0_i32_8 : i32
    scf.if %11 {
      %c0_9 = arith.constant 0 : index
      %c0_10 = arith.constant 0 : index
      %12 = vector.load %arg4[%c0_9, %c0_10] : memref<8x8xf32, #tpu.memory_space<vmem>>, vector<8x8xf32>
      %c0_11 = arith.constant 0 : index
      %c0_12 = arith.constant 0 : index
      %c0_13 = arith.constant 0 : index
      %13 = vector.load %arg3[%c0_11, %c0_12, %c0_13] : memref<1x8x8xf32, #tpu.memory_space<vmem>>, vector<1x8x8xf32>
      %14 = vector.shape_cast %13 : vector<1x8x8xf32> to vector<8x8xf32>
      %15 = vector.shape_cast %12 : vector<8x8xf32> to vector<1x8x8xf32>
      tpu.vector_store %arg3[%c0_11, %c0_12, %c0_13], %15 {strides = array<i32>} : memref<1x8x8xf32, #tpu.memory_space<vmem>>, vector<1x8x8xf32>,
    } else {
    }
    return
  }
  func.func @transform_0(%arg0: i32, %arg1: i32) -> (i32, i32, i32) {
    %c0_i32 = arith.constant 0 : i32
    %c0_i32_0 = arith.constant 0 : i32
    return %arg0, %c0_i32, %arg1 : i32, i32, i32
  }
  func.func @transform_1(%arg0: i32, %arg1: i32) -> (i32, i32, i32) {
    %c0_i32 = arith.constant 0 : i32
    %c0_i32_0 = arith.constant 0 : i32
    %c0_i32_1 = arith.constant 0 : i32
    return %arg0, %c0_i32, %c0_i32_0 : i32, i32, i32
  }
}

</mosaic_0001>

<bundles_post_ra>
// kernel: tpu_custom_call.1
= control target key start
LH: loop header
LB: loop body
LE: loop exit
PB: predicated region body
PF: predicated region fallthrough
CT: control target
= control target key end

     0   :  { %6 = vsyncpa [#allocation4], 0  ;;  %s633_s0 = inlined_call_operand.hbm [shape: f32[2,8,256], index: 0, kind: input, shape index: {}]   ;;  %s634_s1 = inlined_call_operand.hbm [shape: f32[2,8,8], index: 1, kind: output, shape index: {}]  }
   0x1   :  { %8 = vsyncpa [#allocation4 + $0x1], 0 }
   0x2   :  { %9 = vsyncpa [#allocation5], 0 }
   0x3   :  { %11 = vsyncpa [#allocation5 + $0x1], 0  ;;  %s509_s6 = smov 0   ;;  %s511_s7 = smov 0  }
   0x4   :  { %s513_s8 = smov 0   ;;  %s515_s9 = smov 0  }
   0x5   :  { %s517_s10 = smov 0   ;;  %s519_s11 = smov 0  }
   0x6 LB: > { %s306_s12 = sadd.s32 4294967295, %s496_s11   ;;  %s307_s13 = sadd.s32 4294967294, %s496_s11   ;;  %s496_s11 = sphi %s519_s11, %s17_s11   ;;  %s492_s10 = sphi %s517_s10, %s643_s10   ;;  %s488_s9 = sphi %s515_s9, %s642_s9   ;;  %s484_s8 = sphi %s513_s8, %s641_s8   ;;  %s480_s7 = sphi %s511_s7, %s640_s7   ;;  %s476_s6 = sphi %s509_s6, %s639_s6  }
   0x7   : > { %s29_s14 = sadd.s32 1, %s492_s10  ;;  %s38_s15 = sadd.s32 1, %s484_s8 }
   0x8   : > { %p31_p0 = scmp.ge.s32.totalorder %s29_s14, 2  ;;  %p45_p1 = scmp.ne.s32.totalorder %s484_s8, %s480_s7 }
   0x9   : > { %p46_p2 = scmp.eq.s32.totalorder %s496_s11, 0  ;;  %p51_p3 = scmp.ne.s32.totalorder %s480_s7, %s476_s6 }
   0xa   : > { %s645_s14 = smov (%p31_p0, %s29_s14), 0  ;;  %p52_p5 = scmp.eq.s32.totalorder %s306_s12, 0 }
   0xb   : > { %p550_p4 = por %p46_p2, %p45_p1  ;;  %s33_s17 = ssub.s32 %s492_s10, %s645_s14 }
   0xc   : > { %p75_p6 = scmp.eq.s32.totalorder %s306_s12, 1  ;;  %p36_p7 = scmp.eq.s32.totalorder %s33_s17, 0 }
   0xd   : > { %p556_p8 = por %p52_p5, %p51_p3  ;;  %p81_p10 = scmp.eq.s32.totalorder %s307_s13, 1 }
   0xe   : > { %p560_p9 = por %p75_p6, %p45_p1  ;;  %p309_p12 = scmp.ge.s32.totalorder %s496_s11, 2 }
   0xf   : > { %s565_s20 = scalar_select %p36_p7, %s484_s8, %s38_s15  }
  0x10   : > { %p567_p11 = por %p81_p10, %p51_p3  ;;  %p333_p13 = scmp.lt.s32.totalorder %s496_s11, 2 }
  0x11   : > { %s101_s22 = sand.u32 1, %s484_s8   ;;  %s320_s24 = sshll.u32 %s492_s10, 4 }
  0x12   : > { %s310_s23 = sshll.u32 %s101_s22, 4  ;;  %s112_s27 = scalar_lea.hbm %s633_s0, %s320_s24 }
  0x13   : > { %s105_s28 = scalar_lea.vmem [#allocation3], %s310_s23  ;;  %s114_s30 = sshll.u32 %s112_s27, 4  ;;  %s115_s30 = int_to_ptr.hbm [resolvable:$true] %s114_s30 }
  0x14   : > { %s116_s29 = sshll.u32 %s105_s28, 4  ;;  %p326_p0 = pnand %p333_p13, %p550_p4  ;;  %s117_s29 = int_to_ptr.vmem [resolvable:$true] %s116_s29 }
  0x15   : > { %p313_p1 = scmp.ge.s32.totalorder %s496_s11, 1  ;;  %p121_p2 = scmp.lt.s32.totalorder %s496_s11, 3 }
  0x16   : > { %s102_s2 = scalar_lea.sflag [#allocation4], %s101_s22 }
  0x17   : > { %328 = dma.hbm_to_vmem [thread:$0]  (!%p326_p0), %s115_s30, 256, %s117_s29, %s102_s2  }
  0x18   : > { %p122_p3 = pnand %p313_p1, %p121_p2 }
  0x19   : > { %s583_s3 = sand.u32 (!%p122_p3), 1, %s480_s7  }
  0x1a   : > { %125 = sbr.rel (%p122_p3) target bundleno = 177 (0xb1), region = 24  ;;  %s314_s4 = sshll.u32 (!%p122_p3), %s583_s3, 4 }
  0x1b   : > { %s128_s5 = scalar_lea.sflag (!%p122_p3), [#allocation4], %s583_s3  ;;  %s131_s12 = scalar_lea.vmem (!%p122_p3), [#allocation3], %s314_s4 }
  0x1f   : > { %467 = dma.done.wait (%p556_p8), %s128_s5, 256  }
  0x20   : > { %469 = vsyncadd (%p556_p8), %s128_s5, 4294967040  ;;  %v158_v0 = vld [vmem:[%s131_s12] sm:$0xff]  ;;  %v159_v1 = vld [vmem:[%s131_s12 + $0x8] sm:$0xff]  ;;  %vm156_vm0 = vcmask 64512   ;;  %v498_v2 = vmov 0.0   ;;  %s315_s13 = sshll.u32 %s583_s3, 3 }
  0x21   : > { %176 = vmatpush.xpose.msra.mxu0 %v158_v0  ;;  %196 = vmatpush.xpose.msra.mxu1 %v159_v1  ;;  %157 = vst.msk [vmem:[#allocation2] sm:$0xff] %vm156_vm0, %v498_v2  ;;  %s317_s15 = sshll.u32 %s488_s9, 3  ;;  %s150_s22 = scalar_lea.vmem [#allocation6], %s315_s13 }
  0x22   : > { %s220_s18 = scalar_lea.hbm %s634_s1, %s317_s15  ;;  %s222_s23 = sshll.u32 %s150_s22, 4  ;;  %s223_s23 = int_to_ptr.vmem [resolvable:$true] %s222_s23 }
  0x23   : > { %s224_s24 = sshll.u32 %s220_s18, 4  ;;  %s210_s25 = scalar_lea.sflag [#allocation5], %s583_s3  ;;  %s225_s24 = int_to_ptr.hbm [resolvable:$true] %s224_s24 }
  0x24   : > { %177 = vmatmul.f32.vlgmr.msra.gmra.mxu0 %v158_v0  ;;  %197 = vmatmul.f32.vlgmr.msra.gmra.mxu1 %v159_v1  ;;  %s428_s26 = sshra.s32 %s225_s24, 4  ;;  %s434_s29 = scalar_lea.hbm %s634_s1, 16  ;;  %s429_s26 = int_to_ptr.hbm [resolvable:$true] %s428_s26 }
  0x25   : > { %s430_s9 = scalar_lea.hbm %s429_s26, 8  ;;  %p435_p7 = scmp.lt.s32.totalorder %s429_s26, %s634_s1 }
  0x26   : > { %p431_p4 = scmp.ne.s32.totalorder %s429_s26, %s430_s9  ;;  %p436_p8 = scmp.lt.s32.totalorder %s434_s29, %s430_s9 }
  0x28   : > { %v160_v4 = vld [vmem:[#allocation2] sm:$0xff]  ;;  %p432_p5 = pnand %p431_p4, %p560_p9  ;;  %p437_p10 = por %p436_p8, %p435_p7 }
  0x2a   : > { %p433_p6 = pneg %p432_p5 }
  0x2c   : > { %p438_p13 = pnand %p437_p10, %p433_p6 }
  0xa1   : > { %v178_v3 = vpop.f32.mrf.mxu0  ;;  %v198_v5 = vpop.f32.mrf.mxu1 }
  0xa2   : > { %v199_v6 = vadd.f32 %v198_v5, %v178_v3 }
  0xa4   : > { %v201_v7 = vadd.f32 %v199_v6, %v160_v4 }
  0xa6   : > { %203 = vst.msk [vmem:[#allocation2] sm:$0xff] %vm156_vm0, %v201_v7 }
  0xad   : > { %v207_v8 = vld [vmem:[#allocation2] sm:$0xff] }
  0xae   : > { %208 = vst.msk [vmem:[%s150_s22] sm:$0xff] %vm156_vm0, %v207_v8 }
  0xaf   : > { %441 = shalt.err (!%p438_p13)
}
  0xb0   : > { %323 = dma.vmem_to_hbm [thread:$0]  (%p560_p9), %s223_s23, 128, %s225_s24, %s210_s25  }
  0xb1 PF: > { %s236_s3 = sand.u32 1, %s476_s6   ;;  %p330_p0 = pnand %p309_p12, %p567_p11 }
  0xb2   : > { %s237_s4 = scalar_lea.sflag [#allocation5], %s236_s3 }
  0xb3   : > { %p331_p1 = pneg %p330_p0 }
  0xb5   : > { %471 = dma.done.wait (%p331_p1), %s237_s4, 128  }
  0xb6   : > { %473 = vsyncadd (%p331_p1), %s237_s4, 4294967168  ;;  %s17_s11 = sadd.s32 1, %s496_s11   ;;  %s639_s6 = smov %s480_s7 }
  0xb7   : > { %p14_p2 = scmp.ge.s32.totalorder %s17_s11, 4   ;;  %s640_s7 = smov %s484_s8 }
  0xb8   : > { %s641_s8 = smov %s565_s20  ;;  %s642_s9 = smov %s492_s10 }
  0xb9   : > { %s643_s10 = smov %s645_s14  ;;  %16 = sbr.rel (!%p14_p2) target bundleno = 6 (0x6), region = 77 }
  0xbe   :  { %243 = vsyncpa [#allocation4], 1 }
  0xbf   :  { %245 = vsyncpa [#allocation4 + $0x1], 1 }
  0xc0   :  { %246 = vsyncpa [#allocation5], 1 }
  0xc1   :  { %248 = vsyncpa [#allocation5 + $0x1], 1 }

</bundles_post_ra>
